<compile_context>
chip_gen: v7x
topology: tpu7x:2x2x1
jax: 0.10.0
libtpu: 0.0.40
codegen_flags: <defaults>
</compile_context>

<pallas_src>
import jax
import jax.numpy as jnp
from jax.experimental import pallas as pl
from jax.experimental.pallas import tpu as pltpu

# ImageNet normalization constants (same values as the PyTorch module).
IMAGENET_MEAN = (0.485, 0.456, 0.406)
IMAGENET_STD = (0.229, 0.224, 0.225)

_LANES = 128
# 1024 x 128 f32 = 512 KiB per buffer; input + output double-buffered ~ 2 MiB,
# comfortably inside the default scoped VMEM on v5e / v6e / v7x.
_MAX_ROW_TILE = 1024


def _normalize_kernel(mean_ref, inv_std_ref, img_ref, out_ref):
    # mean_ref / inv_std_ref: (C,) f32 scalars in SMEM (scalar prefetch)
    # img_ref / out_ref:      (1, 1, row_tile, 128) VMEM tile of one channel
    c = pl.program_id(1)
    m = mean_ref[c]
    s = inv_std_ref[c]
    out_ref[...] = (img_ref[...] - m) * s


def normalization_forward(img: jax.Array,
                          mean: jax.Array,
                          std: jax.Array) -> jax.Array:
    """img: [B, C, H, W] float32 (NCHW). Returns (img - mean) / std."""
    B, C, H, W = img.shape
    dtype = img.dtype
    HW = H * W

    # Lane-dense layout: each channel's pixels become a (rows, 128) slab.
    rows = pl.cdiv(HW, _LANES)
    # Either the full (small) pixel dim or an 8-aligned 1024-row tile.
    row_tile = rows if rows <= _MAX_ROW_TILE else _MAX_ROW_TILE
    rows_pad = pl.cdiv(rows, row_tile) * row_tile
    HW_pad = rows_pad * _LANES

    img_flat = img.reshape(B, C, HW)
    if HW_pad != HW:
        img_flat = jnp.pad(img_flat, ((0, 0), (0, 0), (0, HW_pad - HW)))
    img4 = img_flat.reshape(B, C, rows_pad, _LANES)

    # Host-side prep: per-channel mean and reciprocal std (replaces the
    # per-element divide with a single multiply in the kernel).
    mean_s = mean.astype(jnp.float32).reshape(C)
    inv_std_s = (1.0 / std.astype(jnp.float32)).reshape(C)

    grid = (B, C, rows_pad // row_tile)

    out4 = pl.pallas_call(
        _normalize_kernel,
        out_shape=jax.ShapeDtypeStruct((B, C, rows_pad, _LANES), dtype),
        grid_spec=pltpu.PrefetchScalarGridSpec(
            num_scalar_prefetch=2,               # mean, inv_std -> SMEM
            grid=grid,
            in_specs=[
                pl.BlockSpec(
                    (1, 1, row_tile, _LANES),
                    lambda b, c, t, mean_s, inv_std_s: (b, c, t, 0)),
            ],
            out_specs=pl.BlockSpec(
                (1, 1, row_tile, _LANES),
                lambda b, c, t, mean_s, inv_std_s: (b, c, t, 0)),
        ),
        compiler_params=pltpu.CompilerParams(
            dimension_semantics=("parallel", "parallel", "parallel")),
    )(mean_s, inv_std_s, img4)

    out_flat = out4.reshape(B, C, HW_pad)
    if HW_pad != HW:
        out_flat = out_flat[:, :, :HW]
    return out_flat.reshape(B, C, H, W)


if __name__ == "__main__":
    key = jax.random.PRNGKey(0)
    B, C, H, W = 2, 3, 16, 16  # ImageNet normalization is defined for C=3
    img = jax.random.uniform(key, (B, C, H, W), dtype=jnp.float32)

    mean = jnp.asarray(IMAGENET_MEAN, dtype=jnp.float32)
    std = jnp.asarray(IMAGENET_STD, dtype=jnp.float32)

    out = normalization_forward(img, mean, std)
    out = jax.block_until_ready(out)

    # Reference check in plain JAX (true division; kernel uses reciprocal-mul,
    # so allow a couple of ulps).
    ref = (img - mean.reshape(1, C, 1, 1)) / std.reshape(1, C, 1, 1)
    assert out.shape == (B, C, H, W)
    assert jnp.allclose(out, ref, atol=1e-5, rtol=1e-5)

    print("KERNEL_OK")
</pallas_src>

<mosaic_0001>
module attributes {stable_mosaic.version = 11 : i64} {
  func.func @_normalize_kernel(%arg0: i32, %arg1: i32, %arg2: i32, %arg3: memref<3xf32, #tpu.memory_space<smem>>, %arg4: memref<3xf32, #tpu.memory_space<smem>>, %arg5: memref<1x1x2x128xf32, #tpu.memory_space<vmem>>, %arg6: memref<1x1x2x128xf32, #tpu.memory_space<vmem>>) attributes {dimension_semantics = [#tpu.dimension_semantics<parallel>, #tpu.dimension_semantics<parallel>, #tpu.dimension_semantics<parallel>], iteration_bounds = array<i64: 2, 3, 1>, scalar_prefetch = 2 : i64, scratch_operands = 0 : i64, tpu.core_type = #tpu.core_type<tc>, window_params = [{transform_indices = @transform_0, window_bounds = array<i64: 1, 1, 2, 128>}, {transform_indices = @transform_1, window_bounds = array<i64: 1, 1, 2, 128>}]} {
    %0 = arith.index_cast %arg1 : i32 to index
    %1 = memref.load %arg3[%0] : memref<3xf32, #tpu.memory_space<smem>>
    %2 = arith.index_cast %arg1 : i32 to index
    %3 = memref.load %arg4[%2] : memref<3xf32, #tpu.memory_space<smem>>
    %c0 = arith.constant 0 : index
    %c0_0 = arith.constant 0 : index
    %c0_1 = arith.constant 0 : index
    %c0_2 = arith.constant 0 : index
    %4 = vector.load %arg5[%c0, %c0_0, %c0_1, %c0_2] : memref<1x1x2x128xf32, #tpu.memory_space<vmem>>, vector<1x1x2x128xf32>
    %5 = vector.broadcast %1 : f32 to vector<1x1x2x128xf32>
    %6 = arith.subf %4, %5 : vector<1x1x2x128xf32>
    %7 = vector.broadcast %3 : f32 to vector<1x1x2x128xf32>
    %8 = arith.mulf %6, %7 : vector<1x1x2x128xf32>
    %c0_3 = arith.constant 0 : index
    %c0_4 = arith.constant 0 : index
    %c0_5 = arith.constant 0 : index
    %c0_6 = arith.constant 0 : index
    %9 = vector.load %arg6[%c0_3, %c0_4, %c0_5, %c0_6] : memref<1x1x2x128xf32, #tpu.memory_space<vmem>>, vector<1x1x2x128xf32>
    tpu.vector_store %arg6[%c0_3, %c0_4, %c0_5, %c0_6], %8 {strides = array<i32>} : memref<1x1x2x128xf32, #tpu.memory_space<vmem>>, vector<1x1x2x128xf32>,
    return
  }
  func.func @transform_0(%arg0: i32, %arg1: i32, %arg2: i32, %arg3: memref<3xf32, #tpu.memory_space<smem>>, %arg4: memref<3xf32, #tpu.memory_space<smem>>) -> (i32, i32, i32, i32) {
    %c0_i32 = arith.constant 0 : i32
    %c0_i32_0 = arith.constant 0 : i32
    return %arg0, %arg1, %arg2, %c0_i32 : i32, i32, i32, i32
  }
  func.func @transform_1(%arg0: i32, %arg1: i32, %arg2: i32, %arg3: memref<3xf32, #tpu.memory_space<smem>>, %arg4: memref<3xf32, #tpu.memory_space<smem>>) -> (i32, i32, i32, i32) {
    %c0_i32 = arith.constant 0 : i32
    %c0_i32_0 = arith.constant 0 : i32
    return %arg0, %arg1, %arg2, %c0_i32 : i32, i32, i32, i32
  }
}

</mosaic_0001>

<bundles_post_ra>
// kernel: tpu_custom_call.1
= control target key start
LH: loop header
LB: loop body
LE: loop exit
PB: predicated region body
PF: predicated region fallthrough
CT: control target
= control target key end

     0   :  { %s769_s0 = inlined_call_operand.hbm [shape: f32[3], index: 0, kind: input, shape index: {}]   ;;  %s770_s2 = inlined_call_operand.hbm [shape: f32[2,3,2,128], index: 2, kind: input, shape index: {}]   ;;  %s771_s3 = inlined_call_operand.hbm [shape: f32[2,3,2,128], index: 3, kind: output, shape index: {}]   ;;  %s772_s1 = inlined_call_operand.vmem [shape: f32[3], index: 1, kind: input, shape index: {}]  }
   0x1   :  { %s382_s14 = scalar_lea.hbm %s769_s0, 16 }
   0x2   :  { %p383_p0 = scmp.ne.s32.totalorder %s769_s0, %s382_s14  ;;  %p386_p1 = scmp.lt.u32.totalorder %s382_s14, %s769_s0 }
   0x4   :  { %p388_p2 = pnand %p386_p1, %p383_p0 }
   0x6   :  { %391 = shalt.err (!%p388_p2)  }
   0x7   :  { %s536_s19 = smov [#allocation3]   ;;  %s10_s24 = sshll.u32 %s772_s1, 4  ;;  %s11_s24 = int_to_ptr.vmem [resolvable:$true] %s10_s24 }
   0x8   :  { %9 = dma.hbm_to_smem %s769_s0, 16, %s536_s19, [#allocation2] }
   0x9   :  { %s392_s25 = scalar_lea.vmem %s11_s24, 16  ;;  %p397_p4 = scmp.lt.s32.totalorder %s11_s24, %s11_s24 }
   0xa   :  { %p393_p3 = scmp.ne.s32.totalorder %s11_s24, %s392_s25  ;;  %p398_p5 = scmp.lt.s32.totalorder %s392_s25, %s392_s25 }
   0xc   :  { %p399_p6 = por %p398_p5, %p397_p4 }
   0xe   :  { %p400_p7 = pnand %p399_p6, %p393_p3 }
  0x10   :  { %403 = shalt.err (!%p400_p7)  }
  0x11   :  { %s537_s26 = smov [#allocation4]  }
  0x12   :  { %13 = dma.vmem_to_smem %s11_s24, 16, %s537_s26, [#allocation2] }
  0x13   :  { %494 = dma.done.wait [#allocation2], 32 }
  0x14   :  { %495 = vsyncadd [#allocation2], 4294967264 }
  0x15   :  { %15 = sfence }
  0x16   :  { %16 = vsyncpa [#allocation6], 0 }
  0x17   :  { %18 = vsyncpa [#allocation6 + $0x1], 0 }
  0x18   :  { %19 = vsyncpa [#allocation7], 0 }
  0x19   :  { %21 = vsyncpa [#allocation7 + $0x1], 0  ;;  %s575_s0 = smov 0   ;;  %s577_s1 = smov 0  }
  0x1a   :  { %s579_s27 = smov 0   ;;  %s581_s28 = smov 0  }
  0x1b   :  { %s583_s29 = smov 0   ;;  %s585_s30 = smov 0  }
  0x1c   :  { %s587_s4 = smov 0   ;;  %s589_s5 = smov 0  }
  0x1d LB: > { %s287_s6 = sadd.s32 4294967295, %s534_s5   ;;  %s288_s7 = sadd.s32 4294967294, %s534_s5   ;;  %s534_s5 = sphi %s589_s5, %s27_s5   ;;  %s530_s4 = sphi %s587_s4, %s788_s4   ;;  %s526_s30 = sphi %s585_s30, %s787_s30   ;;  %s522_s29 = sphi %s583_s29, %s786_s29   ;;  %s518_s28 = sphi %s581_s28, %s785_s28   ;;  %s514_s27 = sphi %s579_s27, %s784_s27   ;;  %s510_s1 = sphi %s577_s1, %s783_s1   ;;  %s506_s0 = sphi %s575_s0, %s782_s0  }
  0x1e   : > { %s42_s8 = sadd.s32 1, %s526_s30  ;;  %s46_s9 = sadd.s32 1, %s530_s4 }
  0x1f   : > { %p44_p8 = scmp.ge.s32.totalorder %s42_s8, 3  ;;  %s57_s10 = sadd.s32 1, %s514_s27 }
  0x20   : > { %p64_p9 = scmp.ne.s32.totalorder %s514_s27, %s510_s1  ;;  %p65_p10 = scmp.eq.s32.totalorder %s534_s5, 0 }
  0x21   : > { %s790_s8 = smov (%p44_p8, %s42_s8), 0  ;;  %s792_s9 = smov (!%p44_p8, %s46_s9), %s530_s4 }
  0x22   : > { %s51_s11 = ssub.s32 %s526_s30, %s790_s8  ;;  %p628_p11 = por %p65_p10, %p64_p9 }
  0x23   : > { %p48_p12 = scmp.ge.s32.totalorder %s792_s9, 2  ;;  %p70_p13 = scmp.ne.s32.totalorder %s510_s1, %s506_s0 }
  0x24   : > { %p71_p0 = scmp.eq.s32.totalorder %s287_s6, 0  ;;  %p98_p1 = scmp.eq.s32.totalorder %s287_s6, 5 }
  0x25   : > { %s794_s9 = smov (%p48_p12, %s792_s9), 0  ;;  %p104_p4 = scmp.eq.s32.totalorder %s288_s7, 5 }
  0x26   : > { %p636_p2 = por %p71_p0, %p70_p13  ;;  %p640_p3 = por %p98_p1, %p64_p9 }
  0x27   : > { %s50_s15 = ssub.s32 %s530_s4, %s794_s9  ;;  %p646_p6 = por %p104_p4, %p70_p13 }
  0x28   : > { %s776_s14 = scalar_select %p640_p3, 1, 0 }
  0x29   : > { %s52_s16 = sor.u32 %s51_s11, %s50_s15  ;;  %p314_p7 = scmp.lt.s32.totalorder %s534_s5, 6 }
  0x2a   : > { %p55_p5 = scmp.eq.s32.totalorder %s52_s16, 0  ;;  %s124_s18 = sand.u32 1, %s514_s27  }
  0x2b   : > { %s777_s17 = scalar_select %p646_p6, 1, 0 }
  0x2c   : > { %s653_s19 = scalar_select %p55_p5, %s514_s27, %s57_s10  }
  0x2d   : > { %s291_s20 = sshll.u32 %s124_s18, 1  ;;  %s300_s21 = smul.u32 3, %s530_s4 }
  0x2e   : > { %s128_s22 = scalar_lea.vmem [#allocation5], %s291_s20  ;;  %p658_p8 = pnand %p314_p7, %p628_p11 }
  0x2f   : > { %s138_s23 = sshll.u32 %s128_s22, 4  ;;  %s134_s25 = sadd.s32 %s526_s30, %s300_s21  ;;  %s663_s23 = int_to_ptr.vmem [resolvable:$true] %s138_s23 }
  0x30   : > { %s292_s26 = sshll.u32 %s134_s25, 5  ;;  %s125_s11 = scalar_lea.sflag [#allocation6], %s124_s18 }
  0x31   : > { %s668_s10 = scalar_lea.hbm %s770_s2, %s292_s26  ;;  %p406_p11 = pneg %p658_p8 }
  0x32   : > { %s404_s12 = scalar_lea.hbm %s668_s10, 32  ;;  %s409_s20 = scalar_lea.hbm %s770_s2, 192 }
  0x33   : > { %p405_p10 = scmp.ne.s32.totalorder %s668_s10, %s404_s12  ;;  %p410_p0 = scmp.lt.u32.totalorder %s668_s10, %s770_s2 }
  0x34   : > { %p411_p1 = scmp.lt.u32.totalorder %s409_s20, %s404_s12  ;;  %p413_p5 = scmp.lt.u32.totalorder %s404_s12, %s668_s10 }
  0x35   : > { %p407_p12 = pnand %p406_p11, %p405_p10 }
  0x36   : > { %p412_p4 = por %p411_p1, %p410_p0 }
  0x37   : > { %p408_p13 = pneg %p407_p12 }
  0x38   : > { %p414_p7 = por %p413_p5, %p412_p4 }
  0x3a   : > { %p415_p9 = pnand %p414_p7, %p408_p13 }
  0x3c   : > { %418 = shalt.err (!%p415_p9)
}
  0x3d   : > { %s419_s18 = scalar_lea.vmem %s663_s23, 32  ;;  %s538_s25 = smov [#allocation5]  }
  0x3e   : > { %p420_p10 = scmp.ne.s32.totalorder %s663_s23, %s419_s18  ;;  %s424_s26 = sshll.u32 %s538_s25, 4  ;;  %s425_s26 = int_to_ptr.vmem [resolvable:$false] %s424_s26 }
  0x3f   : > { %s426_s6 = scalar_lea.vmem %s425_s26, 64  ;;  %p427_p3 = scmp.lt.s32.totalorder %s663_s23, %s425_s26 }
  0x40   : > { %p422_p12 = pnand %p420_p10, %p406_p11  ;;  %p428_p0 = scmp.lt.s32.totalorder %s426_s6, %s419_s18 }
  0x42   : > { %p423_p6 = pneg %p422_p12  ;;  %p429_p1 = por %p428_p0, %p427_p3 }
  0x44   : > { %p430_p4 = pnand %p429_p1, %p423_p6 }
  0x46   : > { %433 = shalt.err (!%p430_p4)
}
  0x47   : > { %309 = dma.hbm_to_vmem [thread:$0]  (!%p658_p8), %s668_s10, 32, %s663_s23, %s125_s11  }
  0x48   : > { %p143_p9 = scmp.lt.s32.totalorder %s534_s5, 7  ;;  %p779_p13 = scmp.ge.s32.totalorder %s534_s5, 1 }
  0x4a   : > { %p144_p11 = pnand %p779_p13, %p143_p9 }
  0x4b   : > { %s700_s7 = sand.u32 (!%p144_p11), 1, %s510_s1  }
  0x4c   : > { %147 = sbr.rel (%p144_p11) target bundleno = 112 (0x70), region = 24  ;;  %s294_s12 = sshll.u32 (!%p144_p11), %s700_s7, 1 }
  0x4d   : > { %s150_s15 = scalar_lea.sflag (!%p144_p11), [#allocation6], %s700_s7  ;;  %s153_s16 = scalar_lea.vmem (!%p144_p11), [#allocation5], %s294_s12 }
  0x53   : > { %497 = dma.done.wait (%p636_p2), %s150_s15, 32  }
  0x54   : > { %499 = vsyncadd (%p636_p2), %s150_s15, 4294967264  ;;  %s172_s23 = sld [smem:[#allocation3 + %s518_s28]]  ;;  %s301_s10 = smul.u32 3, %s522_s29  ;;  %v174_v0 = vld [vmem:[%s153_s16] sm:$0x3] }
  0x55   : > { %s173_s24 = sld [smem:[#allocation4 + %s518_s28]]  ;;  %s171_s20 = scalar_lea.vmem [#allocation8], %s294_s12 }
  0x56   : > { %s193_s11 = sadd.s32 %s518_s28, %s301_s10  ;;  %s197_s21 = sshll.u32 %s171_s20, 4  ;;  %s712_s21 = int_to_ptr.vmem [resolvable:$true] %s197_s21 }
  0x57   : > { %s297_s22 = sshll.u32 %s193_s11, 5  ;;  %s181_s28 = scalar_lea.sflag [#allocation7], %s700_s7 }
  0x58   : > { %s717_s25 = scalar_lea.hbm %s771_s3, %s297_s22  ;;  %s434_s29 = scalar_lea.vmem %s712_s21, 32 }
  0x59   : > { %p435_p2 = scmp.ne.s32.totalorder %s712_s21, %s434_s29  ;;  %p780_p3 = scmp.ne.s32.totalorder %s776_s14, 0 }
  0x5a   : > { %v175_v1 = vstv %s172_s23  ;;  %s539_s26 = smov [#allocation8]  }
  0x5b   : > { %v177_v2 = vstv %s173_s24  ;;  %v176_v3 = vsub.f32 %v174_v0, %v175_v1  ;;  %p436_p6 = pnand %p435_p2, %p780_p3  ;;  %s438_s6 = sshll.u32 %s539_s26, 4  ;;  %s439_s6 = int_to_ptr.vmem [resolvable:$false] %s438_s6 }
  0x5c   : > { %s440_s12 = scalar_lea.vmem %s439_s6, 64  ;;  %p441_p5 = scmp.lt.s32.totalorder %s712_s21, %s439_s6 }
  0x5d   : > { %v178_v4 = vmul.f32 %v177_v2, %v176_v3  ;;  %p437_p8 = pneg %p436_p6  ;;  %p442_p7 = scmp.lt.s32.totalorder %s440_s12, %s434_s29 }
  0x5f   : > { %179 = vst [vmem:[%s171_s20] sm:$0x3] %v178_v4  ;;  %p443_p10 = por %p442_p7, %p441_p5 }
  0x61   : > { %p444_p12 = pnand %p443_p10, %p437_p8 }
  0x63   : > { %447 = shalt.err (!%p444_p12)
}
  0x64   : > { %s448_s7 = scalar_lea.hbm %s717_s25, 32  ;;  %s452_s23 = scalar_lea.hbm %s771_s3, 192 }
  0x65   : > { %p449_p0 = scmp.ne.s32.totalorder %s717_s25, %s448_s7  ;;  %p453_p9 = scmp.lt.u32.totalorder %s717_s25, %s771_s3 }
  0x66   : > { %p454_p13 = scmp.lt.u32.totalorder %s452_s23, %s448_s7  ;;  %p456_p2 = scmp.lt.u32.totalorder %s448_s7, %s717_s25 }
  0x67   : > { %p450_p1 = pnand %p449_p0, %p780_p3 }
  0x68   : > { %p455_p11 = por %p454_p13, %p453_p9 }
  0x69   : > { %p451_p4 = pneg %p450_p1 }
  0x6a   : > { %p457_p6 = por %p456_p2, %p455_p11 }
  0x6c   : > { %p458_p8 = pnand %p457_p6, %p451_p4 }
  0x6e   : > { %461 = shalt.err (!%p458_p8)
}
  0x6f   : > { %304 = dma.vmem_to_hbm [thread:$0]  (%p780_p3), %s712_s21, 32, %s717_s25, %s181_s28  }
  0x70 PF: > { %p315_p5 = scmp.ge.s32.totalorder %s534_s5, 2  ;;  %s209_s11 = sand.u32 1, %s506_s0  }
  0x71   : > { %p781_p7 = scmp.ne.s32.totalorder %s777_s17, 0  ;;  %s210_s20 = scalar_lea.sflag [#allocation7], %s209_s11 }
  0x73   : > { %p311_p10 = pnand %p315_p5, %p781_p7 }
  0x75   : > { %501 = dma.done.wait (!%p311_p10), %s210_s20, 32  }
  0x76   : > { %503 = vsyncadd (!%p311_p10), %s210_s20, 4294967264  ;;  %s27_s5 = sadd.s32 1, %s534_s5   ;;  %s782_s0 = smov %s510_s1 }
  0x77   : > { %p24_p12 = scmp.ge.s32.totalorder %s27_s5, 8   ;;  %s783_s1 = smov %s514_s27 }
  0x78   : > { %s784_s27 = smov %s653_s19  ;;  %s785_s28 = smov %s526_s30 }
  0x79   : > { %s786_s29 = smov %s530_s4  ;;  %s787_s30 = smov %s790_s8 }
  0x7a   : > { %s788_s4 = smov %s794_s9  ;;  %26 = sbr.rel (!%p24_p12) target bundleno = 29 (0x1d), region = 69 }
  0x81   :  { %215 = vsyncpa [#allocation6], 1 }
  0x82   :  { %217 = vsyncpa [#allocation6 + $0x1], 1 }
  0x83   :  { %218 = vsyncpa [#allocation7], 1 }
  0x84   :  { %220 = vsyncpa [#allocation7 + $0x1], 1 }

</bundles_post_ra>
